<compile_context>
chip_gen: v6e
topology: v6e:2x2x1
jax: 0.10.0
libtpu: 0.0.40
codegen_flags: <defaults>
</compile_context>

<pallas_src>
import jax
import jax.numpy as jnp
from jax import lax
from jax.experimental import pallas as pl
from jax.experimental.pallas import tpu as pltpu

EPS = 1e-5


def residual_mlp_kernel(x_ref, w1_ref, w2_ref, vec_ref, o_ref):
    k = pl.program_id(1)          # residual-block axis (inner, "arbitrary")

    # Seed the running activation from the input at the first block of this
    # row tile.  x's block index is constant over k, so it is DMA'd once per
    # row tile; the output block is VMEM-resident for the whole chain.
    @pl.when(k == 0)
    def _():
        o_ref[...] = x_ref[...].astype(jnp.float32)

    x = o_ref[...]                                    # (TN, H) f32 running act
    x_bf = x.astype(jnp.bfloat16)                     # bf16 MXU operand

    vec = vec_ref[0]                                  # (4, H) f32 packed params
    b1, b2 = vec[0:1, :], vec[1:2, :]
    gamma, beta = vec[2:3, :], vec[3:4, :]

    # block(x) = ReLU(ReLU(x W1 + b1) W2 + b2)   (weights pre-transposed, bf16)
    h = jnp.dot(x_bf, w1_ref[0], preferred_element_type=jnp.float32) + b1
    h = jnp.maximum(h, 0.0).astype(jnp.bfloat16)      # cast early for 2nd dot
    h = jnp.dot(h, w2_ref[0], preferred_element_type=jnp.float32) + b2
    h = jnp.maximum(h, 0.0)

    # Residual add + LayerNorm over the hidden dim (one-pass statistics, f32).
    y = x + h
    inv_h = 1.0 / y.shape[-1]
    mean = jnp.sum(y, axis=-1, keepdims=True) * inv_h
    ex2 = jnp.sum(y * y, axis=-1, keepdims=True) * inv_h
    var = jnp.maximum(ex2 - mean * mean, 0.0)
    y = (y - mean) * lax.rsqrt(var + EPS)             # rsqrt -> EUP slot
    o_ref[...] = y * gamma + beta


def residual_mlp(x, w1, b1, w2, b2, gamma, beta, *, row_block=None,
                 vmem_limit_bytes=None):
    """x: (N, H); w1, w2: (n_blocks, H, H) pre-transposed; b/gamma/beta: (n_blocks, 1, H)."""
    n_blocks, H, _ = w1.shape
    N = x.shape[0]

    if row_block is None or row_block >= N:
        row_block = N               # single row tile: weights streamed once
    assert N % row_block == 0, "row_block must divide N"
    n_rows = N // row_block

    # bf16 weight stream; pack the four per-block vectors into one tensor.
    w1 = w1.astype(jnp.bfloat16)
    w2 = w2.astype(jnp.bfloat16)
    vecs = jnp.concatenate([b1, b2, gamma, beta], axis=1).astype(jnp.float32)

    x_spec = pl.BlockSpec((row_block, H), lambda i, k: (i, 0))
    o_spec = pl.BlockSpec((row_block, H), lambda i, k: (i, 0))
    w_spec = pl.BlockSpec((1, H, H), lambda i, k: (k, 0, 0))
    v_spec = pl.BlockSpec((1, 4, H), lambda i, k: (k, 0, 0))

    if vmem_limit_bytes is None:
        act = row_block * H * 4                       # x / out / y tiles (f32)
        wts = 2 * 2 * H * H * 2                       # W1+W2, double-buffered, bf16
        vcs = 2 * 8 * H * 4                           # packed vectors, sublane-padded
        need = 3 * act + wts + vcs
        vmem_limit_bytes = min(max(2 * need, 16 << 20), 64 << 20)

    return pl.pallas_call(
        residual_mlp_kernel,
        out_shape=jax.ShapeDtypeStruct((N, H), jnp.float32),
        grid_spec=pltpu.PrefetchScalarGridSpec(
            num_scalar_prefetch=0,
            grid=(n_rows, n_blocks),
            in_specs=[x_spec, w_spec, w_spec, v_spec],
            out_specs=o_spec,
        ),
        compiler_params=pltpu.CompilerParams(
            dimension_semantics=("parallel", "arbitrary"),
            vmem_limit_bytes=vmem_limit_bytes),
    )(x.astype(jnp.float32), w1, w2, vecs)


def reference_f32(x, w1, b1, w2, b2, gamma, beta):
    """Pure-JAX f32 reference mirroring the PyTorch forward exactly."""
    x = x.astype(jnp.float32)
    for k in range(w1.shape[0]):
        h = jnp.maximum(x @ w1[k] + b1[k, 0], 0.0)
        h = jnp.maximum(h @ w2[k] + b2[k, 0], 0.0)
        y = x + h
        mean = jnp.mean(y, axis=-1, keepdims=True)
        var = jnp.mean((y - mean) ** 2, axis=-1, keepdims=True)
        x = (y - mean) * lax.rsqrt(var + EPS) * gamma[k, 0] + beta[k, 0]
    return x


def reference_bf16(x, w1, b1, w2, b2, gamma, beta):
    """Same math but with the kernel's bf16 matmul operands (f32 accumulate)."""
    x = x.astype(jnp.float32)
    for k in range(w1.shape[0]):
        h = jnp.dot(x.astype(jnp.bfloat16), w1[k].astype(jnp.bfloat16),
                    preferred_element_type=jnp.float32) + b1[k, 0]
        h = jnp.maximum(h, 0.0).astype(jnp.bfloat16)
        h = jnp.dot(h, w2[k].astype(jnp.bfloat16),
                    preferred_element_type=jnp.float32) + b2[k, 0]
        h = jnp.maximum(h, 0.0)
        y = x + h
        mean = jnp.mean(y, axis=-1, keepdims=True)
        var = jnp.mean((y - mean) ** 2, axis=-1, keepdims=True)
        x = (y - mean) * lax.rsqrt(var + EPS) * gamma[k, 0] + beta[k, 0]
    return x


if __name__ == "__main__":
    # Hardware-friendly small shapes: H is a multiple of 128 (lane width) and
    # N a multiple of 8 (sublane), so every tile is dense and unmasked.
    N, H, n_blocks = 128, 128, 3

    key = jax.random.PRNGKey(0)
    kx, k1, k2, k3, k4 = jax.random.split(key, 5)

    x = jax.random.normal(kx, (N, H), dtype=jnp.float32)

    # nn.Linear stores W as (out, in); forward is x @ W.T.  Generate (out, in)
    # weights and pre-transpose so the kernel computes x @ W.
    w1_oi = jax.random.normal(k1, (n_blocks, H, H), dtype=jnp.float32) * 0.05
    w2_oi = jax.random.normal(k2, (n_blocks, H, H), dtype=jnp.float32) * 0.05
    w1 = jnp.swapaxes(w1_oi, -1, -2)
    w2 = jnp.swapaxes(w2_oi, -1, -2)
    b1 = jax.random.normal(k3, (n_blocks, 1, H), dtype=jnp.float32) * 0.05
    b2 = jax.random.normal(k4, (n_blocks, 1, H), dtype=jnp.float32) * 0.05
    gamma = jnp.ones((n_blocks, 1, H), dtype=jnp.float32)   # LN default init
    beta = jnp.zeros((n_blocks, 1, H), dtype=jnp.float32)

    # Single row tile (bandwidth-optimal on single-TC chips).
    out = jax.block_until_ready(residual_mlp(x, w1, b1, w2, b2, gamma, beta))
    # Two row tiles -> exercises the leading "parallel" (megacore) grid axis.
    out2 = jax.block_until_ready(
        residual_mlp(x, w1, b1, w2, b2, gamma, beta, row_block=64))

    ref_bf16 = reference_bf16(x, w1, b1, w2, b2, gamma, beta)
    ref_f32 = reference_f32(x, w1, b1, w2, b2, gamma, beta)

    assert jnp.allclose(out, ref_bf16, atol=1e-2, rtol=1e-2), \
        "mismatch vs bf16-matmul reference"
    assert jnp.allclose(out2, ref_bf16, atol=1e-2, rtol=1e-2), \
        "mismatch vs bf16-matmul reference (row-tiled)"
    # PyTorch-semantics f32 reference: matches up to bf16 matmul rounding.
    assert jnp.allclose(out, ref_f32, atol=1.5e-1, rtol=1.5e-1), \
        "mismatch vs f32 reference"

    print("KERNEL_OK")
</pallas_src>

<mosaic_0001>
module attributes {stable_mosaic.version = 11 : i64} {
  func.func @residual_mlp_kernel(%arg0: i32, %arg1: i32, %arg2: memref<128x128xf32, #tpu.memory_space<vmem>>, %arg3: memref<1x128x128xbf16, #tpu.memory_space<vmem>>, %arg4: memref<1x128x128xbf16, #tpu.memory_space<vmem>>, %arg5: memref<1x4x128xf32, #tpu.memory_space<vmem>>, %arg6: memref<128x128xf32, #tpu.memory_space<vmem>>) attributes {dimension_semantics = [#tpu.dimension_semantics<parallel>, #tpu.dimension_semantics<arbitrary>], iteration_bounds = array<i64: 1, 3>, scalar_prefetch = 0 : i64, scratch_operands = 0 : i64, tpu.core_type = #tpu.core_type<tc>, window_params = [{transform_indices = @transform_0, window_bounds = array<i64: 128, 128>}, {transform_indices = @transform_1, window_bounds = array<i64: 1, 128, 128>}, {transform_indices = @transform_2, window_bounds = array<i64: 1, 128, 128>}, {transform_indices = @transform_3, window_bounds = array<i64: 1, 4, 128>}, {transform_indices = @transform_4, window_bounds = array<i64: 128, 128>}]} {
    %c0_i32 = arith.constant 0 : i32
    %0 = arith.cmpi eq, %arg1, %c0_i32 : i32
    %1 = arith.extui %0 : i1 to i32
    %c0_i32_0 = arith.constant 0 : i32
    %2 = arith.cmpi ne, %1, %c0_i32_0 : i32
    scf.if %2 {
      %c0_22 = arith.constant 0 : index
      %c0_23 = arith.constant 0 : index
      %52 = vector.load %arg2[%c0_22, %c0_23] : memref<128x128xf32, #tpu.memory_space<vmem>>, vector<128x128xf32>
      %c0_24 = arith.constant 0 : index
      %c0_25 = arith.constant 0 : index
      %53 = vector.load %arg6[%c0_24, %c0_25] : memref<128x128xf32, #tpu.memory_space<vmem>>, vector<128x128xf32>
      tpu.vector_store %arg6[%c0_24, %c0_25], %52 {strides = array<i32>} : memref<128x128xf32, #tpu.memory_space<vmem>>, vector<128x128xf32>,
    } else {
    }
    %c0 = arith.constant 0 : index
    %c0_1 = arith.constant 0 : index
    %3 = vector.load %arg6[%c0, %c0_1] : memref<128x128xf32, #tpu.memory_space<vmem>>, vector<128x128xf32>
    %4 = arith.truncf %3 : vector<128x128xf32> to vector<128x128xbf16>
    %c0_2 = arith.constant 0 : index
    %c0_3 = arith.constant 0 : index
    %c0_4 = arith.constant 0 : index
    %5 = vector.load %arg5[%c0_2, %c0_3, %c0_4] : memref<1x4x128xf32, #tpu.memory_space<vmem>>, vector<1x4x128xf32>
    %6 = vector.shape_cast %5 : vector<1x4x128xf32> to vector<4x128xf32>
    %7 = vector.extract_strided_slice %6 {offsets = [0, 0], sizes = [1, 128], strides = [1, 1]} : vector<4x128xf32> to vector<1x128xf32>
    %8 = vector.extract_strided_slice %6 {offsets = [1, 0], sizes = [1, 128], strides = [1, 1]} : vector<4x128xf32> to vector<1x128xf32>
    %9 = vector.extract_strided_slice %6 {offsets = [2, 0], sizes = [1, 128], strides = [1, 1]} : vector<4x128xf32> to vector<1x128xf32>
    %10 = vector.extract_strided_slice %6 {offsets = [3, 0], sizes = [1, 128], strides = [1, 1]} : vector<4x128xf32> to vector<1x128xf32>
    %c0_5 = arith.constant 0 : index
    %c0_6 = arith.constant 0 : index
    %c0_7 = arith.constant 0 : index
    %11 = vector.load %arg3[%c0_5, %c0_6, %c0_7] : memref<1x128x128xbf16, #tpu.memory_space<vmem>>, vector<1x128x128xbf16>
    %12 = vector.shape_cast %11 : vector<1x128x128xbf16> to vector<128x128xbf16>
    %cst = arith.constant dense<0.000000e+00> : vector<128x128xf32>
    %13 = tpu.matmul %4, %12, %cst {dimension_numbers = #tpu.dot_dimension_numbers<[1], [0], [0], [1], [0, 0, 1, 1], [], []>} : vector<128x128xbf16>, vector<128x128xbf16>, vector<128x128xf32> -> vector<128x128xf32>
    %14 = vector.broadcast %7 : vector<1x128xf32> to vector<128x128xf32>
    %15 = arith.addf %13, %14 : vector<128x128xf32>
    %cst_8 = arith.constant 0.000000e+00 : f32
    %16 = vector.broadcast %cst_8 : f32 to vector<128x128xf32>
    %17 = arith.maximumf %15, %16 : vector<128x128xf32>
    %18 = arith.truncf %17 : vector<128x128xf32> to vector<128x128xbf16>
    %c0_9 = arith.constant 0 : index
    %c0_10 = arith.constant 0 : index
    %c0_11 = arith.constant 0 : index
    %19 = vector.load %arg4[%c0_9, %c0_10, %c0_11] : memref<1x128x128xbf16, #tpu.memory_space<vmem>>, vector<1x128x128xbf16>
    %20 = vector.shape_cast %19 : vector<1x128x128xbf16> to vector<128x128xbf16>
    %cst_12 = arith.constant dense<0.000000e+00> : vector<128x128xf32>
    %21 = tpu.matmul %18, %20, %cst_12 {dimension_numbers = #tpu.dot_dimension_numbers<[1], [0], [0], [1], [0, 0, 1, 1], [], []>} : vector<128x128xbf16>, vector<128x128xbf16>, vector<128x128xf32> -> vector<128x128xf32>
    %22 = vector.broadcast %8 : vector<1x128xf32> to vector<128x128xf32>
    %23 = arith.addf %21, %22 : vector<128x128xf32>
    %cst_13 = arith.constant 0.000000e+00 : f32
    %24 = vector.broadcast %cst_13 : f32 to vector<128x128xf32>
    %25 = arith.maximumf %23, %24 : vector<128x128xf32>
    %26 = arith.addf %3, %25 : vector<128x128xf32>
    %cst_14 = arith.constant dense<0.000000e+00> : vector<128xf32>
    %27 = vector.multi_reduction <add>, %26, %cst_14 [1] : vector<128x128xf32> to vector<128xf32>
    %28 = vector.shape_cast %27 : vector<128xf32> to vector<128x1xf32>
    %cst_15 = arith.constant 7.812500e-03 : f32
    %29 = vector.broadcast %cst_15 : f32 to vector<128x1xf32>
    %30 = arith.mulf %28, %29 : vector<128x1xf32>
    %31 = arith.mulf %26, %26 : vector<128x128xf32>
    %cst_16 = arith.constant dense<0.000000e+00> : vector<128xf32>
    %32 = vector.multi_reduction <add>, %31, %cst_16 [1] : vector<128x128xf32> to vector<128xf32>
    %33 = vector.shape_cast %32 : vector<128xf32> to vector<128x1xf32>
    %cst_17 = arith.constant 7.812500e-03 : f32
    %34 = vector.broadcast %cst_17 : f32 to vector<128x1xf32>
    %35 = arith.mulf %33, %34 : vector<128x1xf32>
    %36 = arith.mulf %30, %30 : vector<128x1xf32>
    %37 = arith.subf %35, %36 : vector<128x1xf32>
    %cst_18 = arith.constant 0.000000e+00 : f32
    %38 = vector.broadcast %cst_18 : f32 to vector<128x1xf32>
    %39 = arith.maximumf %37, %38 : vector<128x1xf32>
    %40 = vector.broadcast %30 : vector<128x1xf32> to vector<128x128xf32>
    %41 = arith.subf %26, %40 : vector<128x128xf32>
    %cst_19 = arith.constant 9.99999974E-6 : f32
    %42 = vector.broadcast %cst_19 : f32 to vector<128x1xf32>
    %43 = arith.addf %39, %42 : vector<128x1xf32>
    %44 = math.rsqrt %43 : vector<128x1xf32>
    %45 = vector.broadcast %44 : vector<128x1xf32> to vector<128x128xf32>
    %46 = arith.mulf %41, %45 : vector<128x128xf32>
    %47 = vector.broadcast %9 : vector<1x128xf32> to vector<128x128xf32>
    %48 = arith.mulf %46, %47 : vector<128x128xf32>
    %49 = vector.broadcast %10 : vector<1x128xf32> to vector<128x128xf32>
    %50 = arith.addf %48, %49 : vector<128x128xf32>
    %c0_20 = arith.constant 0 : index
    %c0_21 = arith.constant 0 : index
    %51 = vector.load %arg6[%c0_20, %c0_21] : memref<128x128xf32, #tpu.memory_space<vmem>>, vector<128x128xf32>
    tpu.vector_store %arg6[%c0_20, %c0_21], %50 {strides = array<i32>} : memref<128x128xf32, #tpu.memory_space<vmem>>, vector<128x128xf32>,
    return
  }
  func.func @transform_0(%arg0: i32, %arg1: i32) -> (i32, i32) {
    %c0_i32 = arith.constant 0 : i32
    %c0_i32_0 = arith.constant 0 : i32
    return %arg0, %c0_i32 : i32, i32
  }
  func.func @transform_1(%arg0: i32, %arg1: i32) -> (i32, i32, i32) {
    %c0_i32 = arith.constant 0 : i32
    %c0_i32_0 = arith.constant 0 : i32
    %c0_i32_1 = arith.constant 0 : i32
    return %arg1, %c0_i32, %c0_i32_0 : i32, i32, i32
  }
  func.func @transform_2(%arg0: i32, %arg1: i32) -> (i32, i32, i32) {
    %c0_i32 = arith.constant 0 : i32
    %c0_i32_0 = arith.constant 0 : i32
    %c0_i32_1 = arith.constant 0 : i32
    return %arg1, %c0_i32, %c0_i32_0 : i32, i32, i32
  }
  func.func @transform_3(%arg0: i32, %arg1: i32) -> (i32, i32, i32) {
    %c0_i32 = arith.constant 0 : i32
    %c0_i32_0 = arith.constant 0 : i32
    %c0_i32_1 = arith.constant 0 : i32
    return %arg1, %c0_i32, %c0_i32_0 : i32, i32, i32
  }
  func.func @transform_4(%arg0: i32, %arg1: i32) -> (i32, i32) {
    %c0_i32 = arith.constant 0 : i32
    %c0_i32_0 = arith.constant 0 : i32
    return %arg0, %c0_i32 : i32, i32
  }
}

</mosaic_0001>

<bundles_post_ra>
// kernel: tpu_custom_call.1
= control target key start
LH: loop header
LB: loop body
LE: loop exit
PB: predicated region body
PF: predicated region fallthrough
CT: control target
= control target key end

     0   :  { %s2203_s0 = inlined_call_operand.hbm [shape: f32[128,128], index: 0, kind: input, shape index: {}]   ;;  %s2204_s1 = inlined_call_operand.hbm [shape: bf16[3,128,128], index: 1, kind: input, shape index: {}]   ;;  %s2205_s2 = inlined_call_operand.hbm [shape: bf16[3,128,128], index: 2, kind: input, shape index: {}]   ;;  %s2206_s3 = inlined_call_operand.hbm [shape: f32[3,4,128], index: 3, kind: input, shape index: {}]   ;;  %s2207_s4 = inlined_call_operand.hbm [shape: f32[128,128], index: 4, kind: output, shape index: {}]  }
   0x1   :  { %2208 = sst [smem:[#allocation15_spill]] %s2204_s1 }
   0x2   :  { %2209 = sst [smem:[#allocation16_spill]] %s2205_s2 }
   0x3   :  { %9 = vsyncpa [#allocation3], 0 }
   0x4   :  { %10 = vsyncpa [#allocation6], 0 }
   0x5   :  { %12 = vsyncpa [#allocation6 + $0x1], 0 }
   0x6   :  { %13 = vsyncpa [#allocation9], 0 }
   0x7   :  { %15 = vsyncpa [#allocation9 + $0x1], 0 }
   0x8   :  { %16 = vsyncpa [#allocation4], 0  ;;  %s1685_s15 = smov 0   ;;  %s1687_s16 = smov 0  }
   0x9   :  { %s1689_s17 = smov 0   ;;  %s1691_s18 = smov 0  }
   0xa   :  { %s1693_s19 = smov 0   ;;  %s1695_s20 = smov 0  }
   0xb LB: > { %s31_s21 = sadd.s32 1, %s1643_s19  ;;  %s67_s22 = sadd.s32 1, %s1635_s17  ;;  %s1647_s20 = sphi %s1695_s20, %s22_s20   ;;  %s1643_s19 = sphi %s1693_s19, %s2220_s19   ;;  %s1639_s18 = sphi %s1691_s18, %s2219_s18   ;;  %s1635_s17 = sphi %s1689_s17, %s2218_s17   ;;  %s1631_s16 = sphi %s1687_s16, %s2217_s16   ;;  %s1627_s15 = sphi %s1685_s15, %s2216_s15  }
   0xc   : > { %p32_p0 = scmp.ge.s32.totalorder %s31_s21, 3  ;;  %p74_p1 = scmp.ne.s32.totalorder %s1635_s17, %s1631_s16 }
   0xd   : > { %p75_p2 = scmp.eq.s32.totalorder %s1647_s20, 0  ;;  %p1343_p4 = scmp.lt.s32.totalorder %s1647_s20, 3 }
   0xe   : > { %s2222_s21 = smov (%p32_p0, %s31_s21), 0  ;;  %s198_s24 = sand.u32 1, %s1647_s20  }
   0xf   : > { %p76_p3 = por %p75_p2, %p74_p1  ;;  %s64_s23 = ssub.s32 %s1643_s19, %s2222_s21 }
  0x10   : > { %p65_p5 = scmp.eq.s32.totalorder %s64_s23, 0  ;;  %s1727_s25 = sand.u32 1, %s1635_s17  }
  0x11   : > { %s1216_s26 = sshll.u32 %s1643_s19, 10  ;;  %s1182_s28 = sshll.u32 %s1727_s25, 6 }
  0x12   : > { %s1731_s27 = scalar_select %p65_p5, %s1635_s17, %s67_s22  }
  0x13   : > { %s2210_s1 = sld [smem:[#allocation15_spill]]  ;;  %p1739_p6 = pnand %p1343_p4, %p76_p3 }
  0x14   : > { %s202_s7 = scalar_lea.vmem [#allocation5], %s1182_s28  ;;  %s1743_s9 = scalar_lea.sflag [#allocation6], %s198_s24 }
  0x15   : > { %s209_s8 = sshll.u32 %s202_s7, 4  ;;  %p1453_p7 = pneg %p1739_p6  ;;  %s210_s8 = int_to_ptr.vmem [resolvable:$true] %s209_s8 }
  0x16   : > { %s1464_s10 = scalar_lea.vmem %s210_s8, 1024  ;;  %s1649_s11 = smov [#allocation5]  }
  0x17   : > { %p1465_p8 = scmp.ne.s32.totalorder %s210_s8, %s1464_s10  ;;  %s1469_s12 = sshll.u32 %s1649_s11, 4  ;;  %s1470_s12 = int_to_ptr.vmem [resolvable:$false] %s1469_s12 }
  0x18   : > { %s1471_s13 = scalar_lea.vmem %s1470_s12, 2048  ;;  %p1472_p11 = scmp.lt.s32.totalorder %s210_s8, %s1470_s12 }
  0x19   : > { %s208_s5 = scalar_lea.hbm %s2210_s1, %s1216_s26  ;;  %p1467_p9 = pnand %p1465_p8, %p1453_p7 }
  0x1a   : > { %p1473_p12 = scmp.lt.s32.totalorder %s1471_s13, %s1464_s10 }
  0x1b   : > { %p1468_p10 = pneg %p1467_p9 }
  0x1c   : > { %p1474_p13 = por %p1473_p12, %p1472_p11 }
  0x1e   : > { %p1475_p0 = pnand %p1474_p13, %p1468_p10 }
  0x20   : > { %1478 = shalt.err (!%p1475_p0)
}
  0x21   : > { %s1650_s14 = smov 64   ;;  %s1651_s22 = smov 4  }
  0x22   : > { %1335 = dma.hbm_to_vmem [thread:$0]  (!%p1739_p6), %s208_s5, 1024, %s210_s8, %s1743_s9, %s1650_s14, %s1650_s14, %s1651_s22  }
  0x23   : > { %s2212_s2 = sld [smem:[#allocation16_spill]]  ;;  %s223_s30 = scalar_lea.vmem [#allocation7], %s1182_s28 }
  0x24   : > { %s230_s7 = sshll.u32 %s223_s30, 4  ;;  %s1766_s10 = sadd.s32 4294967295, %s1647_s20   ;;  %s1763_s7 = int_to_ptr.vmem [resolvable:$true] %s230_s7 }
  0x25   : > { %p80_p1 = scmp.ne.s32.totalorder %s1631_s16, %s1627_s15  ;;  %p81_p2 = scmp.eq.s32.totalorder %s1766_s10, 0 }
  0x26   : > { %p1179_p3 = scmp.ge.s32.totalorder %s1647_s20, 1  ;;  %p169_p4 = scmp.lt.s32.totalorder %s1647_s20, 4 }
  0x27   : > { %p1775_p5 = por %p81_p2, %p80_p1  ;;  %s1652_s5 = smov [#allocation2]  }
  0x28   : > { %p1779_p8 = pnand %p1179_p3, %p169_p4  ;;  %s184_s8 = sshll.u32 %s1652_s5, 4  ;;  %s1785_s8 = int_to_ptr.vmem [resolvable:$true] %s184_s8 }
  0x29   : > { %s1761_s29 = scalar_lea.hbm %s2212_s2, %s1216_s26  ;;  %s1188_s11 = sshll.u32 %s1727_s25, 2 }
  0x2a   : > { %p1328_p9 = pneg %p1779_p8  ;;  %s1492_s12 = scalar_lea.vmem %s1763_s7, 1024 }
  0x2b   : > { %p1493_p11 = scmp.ne.s32.totalorder %s1763_s7, %s1492_s12  ;;  %s1653_s13 = smov [#allocation7]  }
  0x2c   : > { %p1789_p10 = pnand %p1328_p9, %p81_p2  ;;  %s1497_s23 = sshll.u32 %s1653_s13, 4  ;;  %s1498_s23 = int_to_ptr.vmem [resolvable:$false] %s1497_s23 }
  0x2d   : > { %p1495_p12 = pnand %p1493_p11, %p1453_p7  ;;  %s1499_s24 = scalar_lea.vmem %s1498_s23, 2048 }
  0x2e   : > { %p1500_p0 = scmp.lt.s32.totalorder %s1763_s7, %s1498_s23  ;;  %p1501_p1 = scmp.lt.s32.totalorder %s1499_s24, %s1492_s12 }
  0x2f   : > { %p1496_p13 = pneg %p1495_p12 }
  0x30   : > { %p1502_p3 = por %p1501_p1, %p1500_p0 }
  0x32   : > { %p1503_p4 = pnand %p1502_p3, %p1496_p13 }
  0x34   : > { %1506 = shalt.err (!%p1503_p4)
}
  0x35   : > { %1338 = dma.hbm_to_vmem [thread:$0]  (!%p1739_p6), %s1761_s29, 1024, %s1763_s7, %s1743_s9, %s1650_s14, %s1650_s14, %s1651_s22  }
  0x36   : > { %p1509_p9 = pneg %p1789_p10  ;;  %s1518_s30 = scalar_lea.vmem %s1785_s8, 2048 }
  0x37   : > { %p1519_p11 = scmp.ne.s32.totalorder %s1785_s8, %s1518_s30  ;;  %p1526_p0 = scmp.lt.s32.totalorder %s1785_s8, %s1785_s8 }
  0x38   : > { %p1527_p1 = scmp.lt.s32.totalorder %s1518_s30, %s1518_s30 }
  0x39   : > { %p1521_p12 = pnand %p1519_p11, %p1509_p9 }
  0x3a   : > { %p1528_p3 = por %p1527_p1, %p1526_p0 }
  0x3b   : > { %p1522_p13 = pneg %p1521_p12 }
  0x3d   : > { %p1529_p4 = pnand %p1528_p3, %p1522_p13 }
  0x3f   : > { %1532 = shalt.err (!%p1529_p4)
}
  0x40   : > { %s1654_s5 = smov 128   ;;  %s1655_s9 = smov 8  }
  0x41   : > { %1331 = dma.hbm_to_vmem [thread:$0]  (!%p1789_p10), %s2203_s0, 2048, %s1785_s8, [#allocation3], %s1654_s5, %s1654_s5, %s1655_s9  }
  0x42   : > { %s1189_s29 = sshll.u32 %s1643_s19, 6  ;;  %s244_s7 = scalar_lea.vmem [#allocation8], %s1188_s11 }
  0x43   : > { %s251_s12 = sshll.u32 %s244_s7, 4  ;;  %s249_s24 = scalar_lea.hbm %s2206_s3, %s1189_s29  ;;  %s252_s12 = int_to_ptr.vmem [resolvable:$true] %s251_s12 }
  0x44   : > { %s241_s30 = scalar_lea.sflag [#allocation9], %s1727_s25  ;;  %s1546_s1 = scalar_lea.vmem %s252_s12, 64 }
  0x45   : > { %p1547_p9 = scmp.ne.s32.totalorder %s252_s12, %s1546_s1  ;;  %s1656_s15 = smov [#allocation8]  }
  0x46   : > { %s1551_s2 = sshll.u32 %s1656_s15, 4  ;;  %s1552_s2 = int_to_ptr.vmem [resolvable:$false] %s1551_s2 }
  0x47   : > { %p1549_p11 = pnand %p1547_p9, %p1453_p7  ;;  %s1553_s8 = scalar_lea.vmem %s1552_s2, 128 }
  0x48   : > { %p1554_p10 = scmp.lt.s32.totalorder %s252_s12, %s1552_s2  ;;  %p1555_p13 = scmp.lt.s32.totalorder %s1553_s8, %s1546_s1 }
  0x49   : > { %p1550_p12 = pneg %p1549_p11 }
  0x4a   : > { %p1556_p0 = por %p1555_p13, %p1554_p10 }
  0x4c   : > { %p1557_p1 = pnand %p1556_p0, %p1550_p12 }
  0x4e   : > { %1560 = shalt.err (!%p1557_p1)
}
  0x4f   : > { %1341 = dma.hbm_to_vmem [thread:$0]  (!%p1739_p6), %s249_s24, 64, %s252_s12, %s241_s30  }
  0x50   : > { %260 = sbr.rel (%p1779_p8) target bundleno = 782 (0x30e), region = 36 }
  0x55   : > { %1610 = dma.done.wait (%p81_p2), [#allocation3], 2048  }
  0x56   : > { %1612 = vsyncadd (%p81_p2), [#allocation3], 4294965248  ;;  %s266_s2 = sand.u32 1, %s1766_s10   ;;  %s268_s1 = sand.u32 1, %s1631_s16  }
  0x57   : > { %s1192_s25 = sshll.u32 %s268_s1, 6  ;;  %s267_s11 = scalar_lea.sflag [#allocation6], %s266_s2 }
  0x58   : > { %s1840_s5 = scalar_lea.vmem [#allocation5], %s1192_s25 }
  0x59   : > { %1614 = dma.done.wait (%p1775_p5), %s267_s11, 2048  }
  0x5a   : > { %1616 = vsyncadd (%p1775_p5), %s267_s11, 4294965248  ;;  %s1194_s6 = sshll.u32 %s268_s1, 2  ;;  %s1846_s28 = scalar_lea.vmem [#allocation7], %s1192_s25 }
  0x5b   : > { %s285_s9 = scalar_lea.sflag [#allocation9], %s268_s1  ;;  %s1848_s14 = scalar_lea.vmem [#allocation8], %s1194_s6 }
  0x5c   : > { %1618 = dma.done.wait (%p1775_p5), %s285_s9, 64  }
  0x5d   : > { %1620 = vsyncadd (%p1775_p5), %s285_s9, 4294967232  ;;  %p1195_p6 = scmp.ne.s32.totalorder %s1639_s18, 0 }
  0x5f   : > { %324 = sbr.rel (%p1195_p6) target bundleno = 109 (0x6d), region = 56 }
  0x64   : > { %v325_v0 = vld [vmem:[#allocation2] sm:$0xff]  ;;  %v326_v1 = vld [vmem:[#allocation2 + $0x8] sm:$0xff]  ;;  %v327_v2 = vld [vmem:[#allocation2 + $0x10] sm:$0xff] }
  0x65   : > { %341 = vst [vmem:[#allocation10] sm:$0xff] %v325_v0  ;;  %342 = vst [vmem:[#allocation10 + $0x8] sm:$0xff] %v326_v1  ;;  %v328_v3 = vld [vmem:[#allocation2 + $0x18] sm:$0xff]  ;;  %v329_v4 = vld [vmem:[#allocation2 + $0x20] sm:$0xff] }
  0x66   : > { %343 = vst [vmem:[#allocation10 + $0x10] sm:$0xff] %v327_v2  ;;  %v330_v5 = vld [vmem:[#allocation2 + $0x28] sm:$0xff]  ;;  %344 = vst [vmem:[#allocation10 + $0x18] sm:$0xff] %v328_v3  ;;  %v331_v6 = vld [vmem:[#allocation2 + $0x30] sm:$0xff] }
  0x67   : > { %345 = vst [vmem:[#allocation10 + $0x20] sm:$0xff] %v329_v4  ;;  %346 = vst [vmem:[#allocation10 + $0x28] sm:$0xff] %v330_v5  ;;  %v332_v7 = vld [vmem:[#allocation2 + $0x38] sm:$0xff]  ;;  %v333_v8 = vld [vmem:[#allocation2 + $0x40] sm:$0xff] }
  0x68   : > { %347 = vst [vmem:[#allocation10 + $0x30] sm:$0xff] %v331_v6  ;;  %348 = vst [vmem:[#allocation10 + $0x38] sm:$0xff] %v332_v7  ;;  %v334_v9 = vld [vmem:[#allocation2 + $0x48] sm:$0xff]  ;;  %v335_v10 = vld [vmem:[#allocation2 + $0x50] sm:$0xff] }
  0x69   : > { %349 = vst [vmem:[#allocation10 + $0x40] sm:$0xff] %v333_v8  ;;  %v336_v11 = vld [vmem:[#allocation2 + $0x58] sm:$0xff]  ;;  %350 = vst [vmem:[#allocation10 + $0x48] sm:$0xff] %v334_v9  ;;  %v337_v12 = vld [vmem:[#allocation2 + $0x60] sm:$0xff] }
  0x6a   : > { %351 = vst [vmem:[#allocation10 + $0x50] sm:$0xff] %v335_v10  ;;  %352 = vst [vmem:[#allocation10 + $0x58] sm:$0xff] %v336_v11  ;;  %v338_v13 = vld [vmem:[#allocation2 + $0x68] sm:$0xff]  ;;  %v339_v14 = vld [vmem:[#allocation2 + $0x70] sm:$0xff] }
  0x6b   : > { %353 = vst [vmem:[#allocation10 + $0x60] sm:$0xff] %v337_v12  ;;  %354 = vst [vmem:[#allocation10 + $0x68] sm:$0xff] %v338_v13  ;;  %v340_v15 = vld [vmem:[#allocation2 + $0x78] sm:$0xff] }
  0x6c   : > { %355 = vst [vmem:[#allocation10 + $0x70] sm:$0xff] %v339_v14  ;;  %356 = vst [vmem:[#allocation10 + $0x78] sm:$0xff] %v340_v15 }
  0x6d PF: > { %v1403_v16 = vld [vmem:[%s1840_s5 + $0x38] sm:$0xff]   ;;  %v1404_v17 = vld [vmem:[%s1840_s5 + $0x30] sm:$0xff]   ;;  %v1405_v18 = vld [vmem:[%s1840_s5 + $0x28] sm:$0xff]   ;;  %v398_v56 = vlaneseq  ;;  %s1657_s18 = smov [#allocation10]   ;;  %p1345_p7 = scmp.eq.s32.totalorder %s1766_s10, 2 }
  0x6e   : > { %1250 = vmatprep.subr.bf16.mxu0 %v1403_v16  ;;  %v1406_v19 = vld [vmem:[%s1840_s5 + $0x20] sm:$0xff]   ;;  %v1859_v20 = vld [vmem:[#allocation10] sm:$0xff]  ;;  %v1861_v21 = vld [vmem:[#allocation10 + $0x8] sm:$0xff]  ;;  %s1057_s26 = sshll.u32 %s1657_s18, 4  ;;  %s1058_s26 = int_to_ptr.vmem [resolvable:$true] %s1057_s26 }
  0x6f   : > { %1251 = vmatpush3.bf16.msra.mxu0 %v1403_v16  ;;  %v373_v22 = vpack.c.bf16 %v1861_v21, %v1859_v20  ;;  %v1407_v23 = vld [vmem:[%s1840_s5 + $0x18] sm:$0xff]   ;;  %v1412_v25 = vld [vmem:[%s1846_s28 + $0x30] sm:$0xff]   ;;  %v1413_v27 = vld [vmem:[%s1846_s28 + $0x28] sm:$0xff]   ;;  %v1919_v57 = vshrl.u32 %v398_v56, 7  ;;  %s1561_s22 = scalar_lea.vmem %s1058_s26, 2048  ;;  %p1568_p3 = scmp.lt.s32.totalorder %s1058_s26, %s1058_s26 }
  0x70   : > { %1252 = vmatprep.subr.bf16.mxu0 %v1404_v17  ;;  %v1411_v24 = vld [vmem:[%s1846_s28 + $0x38] sm:$0xff]   ;;  %v1408_v26 = vld [vmem:[%s1840_s5 + $0x10] sm:$0xff]   ;;  %v1409_v28 = vld [vmem:[%s1840_s5 + $0x8] sm:$0xff]   ;;  %p1562_p2 = scmp.ne.s32.totalorder %s1058_s26, %s1561_s22  ;;  %p1569_p4 = scmp.lt.s32.totalorder %s1561_s22, %s1561_s22 }
  0x71   : > { %1266 = vmatprep.mubr.bf16.mxu0 %v373_v22  ;;  %1282 = vmatprep.subr.bf16.mxu1 %v1411_v24  ;;  %v1414_v29 = vld [vmem:[%s1846_s28 + $0x20] sm:$0xff]   ;;  %v1415_v31 = vld [vmem:[%s1846_s28 + $0x18] sm:$0xff]   ;;  %v1878_v34 = vld [vmem:[#allocation10 + $0x20] sm:$0xff]  ;;  %v400_v58 = vsub.s32 0, %v1919_v57 }
  0x72   : > { %1283 = vmatpush3.bf16.msra.mxu1 %v1411_v24  ;;  %v1410_v30 = vld [vmem:[%s1840_s5] sm:$0xff]   ;;  %v1874_v32 = vld [vmem:[#allocation10 + $0x10] sm:$0xff]  ;;  %v1880_v35 = vld [vmem:[#allocation10 + $0x28] sm:$0xff]  ;;  %p1563_p5 = pnand %p1562_p2, %p1345_p7  ;;  %p1570_p9 = por %p1569_p4, %p1568_p3 }
  0x73   : > { %1253 = vmatpush3.bf16.msra.mxu0 %v1404_v17  ;;  %1284 = vmatprep.subr.bf16.mxu1 %v1412_v25  ;;  %v1876_v33 = vld [vmem:[#allocation10 + $0x18] sm:$0xff]  ;;  %v375_v37 = vpack.c.bf16 %v1880_v35, %v1878_v34  ;;  %v1886_v38 = vld [vmem:[#allocation10 + $0x30] sm:$0xff]  ;;  %v1890_v40 = vld [vmem:[#allocation10 + $0x40] sm:$0xff] }
  0x74   : > { %1254 = vmatprep.subr.bf16.mxu0 %v1405_v18  ;;  %v374_v36 = vpack.c.bf16 %v1876_v33, %v1874_v32  ;;  %v1888_v39 = vld [vmem:[#allocation10 + $0x38] sm:$0xff]  ;;  %v1892_v41 = vld [vmem:[#allocation10 + $0x48] sm:$0xff]  ;;  %v1898_v44 = vld [vmem:[#allocation10 + $0x50] sm:$0xff]  ;;  %p1564_p8 = pneg %p1563_p5 }
  0x75   : > { %v376_v42 = vpack.c.bf16 %v1888_v39, %v1886_v38  ;;  %v377_v43 = vpack.c.bf16 %v1892_v41, %v1890_v40  ;;  %v1900_v45 = vld [vmem:[#allocation10 + $0x58] sm:$0xff]  ;;  %v1902_v46 = vld [vmem:[#allocation10 + $0x60] sm:$0xff]  ;;  %v1904_v47 = vld [vmem:[#allocation10 + $0x68] sm:$0xff] }
  0x76   : > { %1285 = vmatpush3.bf16.msra.mxu1 %v1412_v25  ;;  %v378_v48 = vpack.c.bf16 %v1900_v45, %v1898_v44  ;;  %v379_v49 = vpack.c.bf16 %v1904_v47, %v1902_v46  ;;  %v1910_v50 = vld [vmem:[#allocation10 + $0x70] sm:$0xff]  ;;  %v1912_v51 = vld [vmem:[#allocation10 + $0x78] sm:$0xff]  ;;  %v1416_v53 = vld [vmem:[%s1846_s28 + $0x10] sm:$0xff]   ;;  %p1571_p11 = pnand %p1570_p9, %p1564_p8 }
  0x77   : > { %1255 = vmatpush3.bf16.msra.mxu0 %v1405_v18  ;;  %1286 = vmatprep.subr.bf16.mxu1 %v1413_v27  ;;  %v380_v52 = vpack.c.bf16 %v1912_v51, %v1910_v50  ;;  %v1417_v54 = vld [vmem:[%s1846_s28 + $0x8] sm:$0xff]   ;;  %v1418_v55 = vld [vmem:[%s1846_s28] sm:$0xff]  }
  0x78   : > { %1256 = vmatprep.subr.bf16.mxu0 %v1406_v19  ;;  %v1923_v59 = vld [vmem:[%s1848_s14] sm:$0xf] }
  0x79   : > { %v401_v61 = vrot.slane %v1923_v59, %v400_v58 }
  0x7a   : > { %1287 = vmatpush3.bf16.msra.mxu1 %v1413_v27 }
  0x7b   : > { %1257 = vmatpush3.bf16.msra.mxu0 %v1406_v19  ;;  %1288 = vmatprep.subr.bf16.mxu1 %v1414_v29 }
  0x7c   : > { %1258 = vmatprep.subr.bf16.mxu0 %v1407_v23 }
  0x7e   : > { %1289 = vmatpush3.bf16.msra.mxu1 %v1414_v29 }
  0x7f   : > { %1259 = vmatpush3.bf16.msra.mxu0 %v1407_v23  ;;  %1290 = vmatprep.subr.bf16.mxu1 %v1415_v31 }
  0x80   : > { %1260 = vmatprep.subr.bf16.mxu0 %v1408_v26 }
  0x82   : > { %1291 = vmatpush3.bf16.msra.mxu1 %v1415_v31 }
  0x83   : > { %1261 = vmatpush3.bf16.msra.mxu0 %v1408_v26  ;;  %1292 = vmatprep.subr.bf16.mxu1 %v1416_v53 }
  0x84   : > { %1262 = vmatprep.subr.bf16.mxu0 %v1409_v28 }
  0x86   : > { %1293 = vmatpush3.bf16.msra.mxu1 %v1416_v53 }
  0x87   : > { %1263 = vmatpush3.bf16.msra.mxu0 %v1409_v28  ;;  %1294 = vmatprep.subr.bf16.mxu1 %v1417_v54 }
  0x88   : > { %1264 = vmatprep.subr.bf16.mxu0 %v1410_v30 }
  0x8a   : > { %1295 = vmatpush3.bf16.msra.mxu1 %v1417_v54 }
  0x8b   : > { %1265 = vmatpush3.bf16.msra.mxu0 %v1410_v30  ;;  %1296 = vmatprep.subr.bf16.mxu1 %v1418_v55 }
  0x8e   : > { %1267 = vmatmul.mubr.bf16.vlgmr.msra.gmra.mxu0 %v374_v36  ;;  %1297 = vmatpush3.bf16.msra.mxu1 %v1418_v55 }
  0x8f   : > { %1270 = vmatprep.mubr.bf16.mxu0 %v375_v37 }
  0x96   : > { %1271 = vmatmul.mubr.bf16.gmra.mxu0 %v376_v42 }
  0x97   : > { %1274 = vmatprep.mubr.bf16.mxu0 %v377_v43 }
  0x9e   : > { %1275 = vmatmul.mubr.bf16.gmra.mxu0 %v378_v48 }
  0x9f   : > { %1278 = vmatprep.mubr.bf16.mxu0 %v379_v49 }
  0xa6   : > { %1279 = vmatmul.mubr.bf16.gmra.mxu0 %v380_v52 }
 0x14e   : > { %v1268_v60 = vpop.f32.mrf.mxu0 }
 0x14f   : > { %v493_v2 = vadd.f32 %v1268_v60, %v401_v61 }
 0x150   : > { %v484_v62 = vpop.f32.mrf.mxu0 }
 0x151   : > { %v485_v0 = vadd.f32 %v484_v62, %v401_v61  ;;  %v549_v9 = vmax.f32 %v493_v2, 0.0 }
 0x152   : > { %v1269_v63 = vpop.f32.mrf.mxu0 }
 0x153   : > { %v496_v1 = vadd.f32 %v1269_v63, %v401_v61  ;;  %v547_v7 = vmax.f32 %v485_v0, 0.0 }
 0x154   : > { %v487_v3 = vpop.f32.mrf.mxu0 }
 0x155   : > { %v488_v4 = vadd.f32 %v487_v3, %v401_v61  ;;  %v550_v5 = vmax.f32 %v496_v1, 0.0 }
 0x156   : > { %v1272_v6 = vpop.f32.mrf.mxu0 }
 0x157   : > { %v548_v8 = vmax.f32 %v488_v4, 0.0  ;;  %v509_v10 = vadd.f32 %v1272_v6, %v401_v61  ;;  %v564_v14 = vpack.c.bf16 %v550_v5, %v549_v9 }
 0x158   : > { %v500_v11 = vpop.f32.mrf.mxu0 }
 0x159   : > { %v501_v12 = vadd.f32 %v500_v11, %v401_v61  ;;  %v563_v13 = vpack.c.bf16 %v548_v8, %v547_v7  ;;  %v553_v17 = vmax.f32 %v509_v10, 0.0  ;;  %v589_v8 = vsub.s32 1, %v1919_v57 }
 0x15a   : > { %v1273_v15 = vpop.f32.mrf.mxu0 }
 0x15b   : > { %v512_v16 = vadd.f32 %v1273_v15, %v401_v61  ;;  %1298 = vmatprep.mubr.bf16.mxu1 %v563_v13  ;;  %v551_v19 = vmax.f32 %v501_v12, 0.0  ;;  %v1928_v9 = vrot.slane %v1923_v59, %v589_v8 }
 0x15c   : > { %v503_v18 = vpop.f32.mrf.mxu0  ;;  %1299 = vmatmul.mubr.bf16.vlgmr.msra.gmra.mxu1 %v564_v14 }
 0x15d   : > { %v554_v22 = vmax.f32 %v512_v16, 0.0  ;;  %v504_v23 = vadd.f32 %v503_v18, %v401_v61 }
 0x15e   : > { %v1276_v24 = vpop.f32.mrf.mxu0 }
 0x15f   : > { %v552_v25 = vmax.f32 %v504_v23, 0.0  ;;  %v566_v26 = vpack.c.bf16 %v554_v22, %v553_v17  ;;  %v525_v27 = vadd.f32 %v1276_v24, %v401_v61 }
 0x160   : > { %v516_v28 = vpop.f32.mrf.mxu0 }
 0x161   : > { %v565_v29 = vpack.c.bf16 %v552_v25, %v551_v19  ;;  %v517_v30 = vadd.f32 %v516_v28, %v401_v61  ;;  %v557_v37 = vmax.f32 %v525_v27, 0.0 }
 0x162   : > { %v1277_v31 = vpop.f32.mrf.mxu0 }
 0x163   : > { %v528_v36 = vadd.f32 %v1277_v31, %v401_v61  ;;  %1302 = vmatprep.mubr.bf16.mxu1 %v565_v29  ;;  %v555_v43 = vmax.f32 %v517_v30, 0.0 }
 0x164   : > { %1303 = vmatmul.mubr.bf16.gmra.mxu1 %v566_v26  ;;  %v519_v42 = vpop.f32.mrf.mxu0 }
 0x165   : > { %v558_v48 = vmax.f32 %v528_v36, 0.0  ;;  %v520_v49 = vadd.f32 %v519_v42, %v401_v61 }
 0x166   : > { %v1280_v52 = vpop.f32.mrf.mxu0 }
 0x167   : > { %v556_v53 = vmax.f32 %v520_v49, 0.0  ;;  %v568_v54 = vpack.c.bf16 %v558_v48, %v557_v37  ;;  %v541_v55 = vadd.f32 %v1280_v52, %v401_v61 }
 0x168   : > { %v532_v56 = vpop.f32.mrf.mxu0 }
 0x169   : > { %v567_v58 = vpack.c.bf16 %v556_v53, %v555_v43  ;;  %v533_v60 = vadd.f32 %v532_v56, %v401_v61  ;;  %v561_v0 = vmax.f32 %v541_v55, 0.0 }
 0x16a   : > { %v1281_v62 = vpop.f32.mrf.mxu0 }
 0x16b   : > { %1306 = vmatprep.mubr.bf16.mxu1 %v567_v58  ;;  %v544_v63 = vadd.f32 %v1281_v62, %v401_v61  ;;  %v559_v2 = vmax.f32 %v533_v60, 0.0 }
 0x16c   : > { %1307 = vmatmul.mubr.bf16.gmra.mxu1 %v568_v54  ;;  %v535_v1 = vpop.f32.mrf.mxu0 }
 0x16d   : > { %v562_v3 = vmax.f32 %v544_v63, 0.0  ;;  %v536_v4 = vadd.f32 %v535_v1, %v401_v61 }
 0x16f   : > { %v560_v5 = vmax.f32 %v536_v4, 0.0  ;;  %v570_v6 = vpack.c.bf16 %v562_v3, %v561_v0 }
 0x171   : > { %v569_v7 = vpack.c.bf16 %v560_v5, %v559_v2 }
 0x173   : > { %1310 = vmatprep.mubr.bf16.mxu1 %v569_v7 }
 0x174   : > { %1311 = vmatmul.mubr.bf16.gmra.mxu1 %v570_v6 }
 0x21c   : > { %v1300_v10 = vpop.f32.mrf.mxu1 }
 0x21d   : > { %v682_v11 = vadd.f32 %v1300_v10, %v1928_v9 }
 0x21e   : > { %v673_v12 = vpop.f32.mrf.mxu1 }
 0x21f   : > { %v738_v13 = vmax.f32 %v682_v11, 0.0  ;;  %v674_v14 = vadd.f32 %v673_v12, %v1928_v9 }
 0x220   : > { %v1301_v15 = vpop.f32.mrf.mxu1 }
 0x221   : > { %v1933_v61 = vadd.f32 %v738_v13, %v1874_v32  ;;  %v736_v16 = vmax.f32 %v674_v14, 0.0  ;;  %v685_v17 = vadd.f32 %v1301_v15, %v1928_v9 }
 0x222   : > { %v676_v18 = vpop.f32.mrf.mxu1 }
 0x223   : > { %v1937_v19 = vadd.f32 %v736_v16, %v1859_v20  ;;  %v739_v22 = vmax.f32 %v685_v17, 0.0  ;;  %v677_v23 = vadd.f32 %v676_v18, %v1928_v9  ;;  %772 = vadd.xlane.f32.xlu1 %v1933_v61  ;;  %v818_v27 = vmul.f32 %v1933_v61, %v1933_v61 }
 0x224   : > { %v1304_v24 = vpop.f32.mrf.mxu1 }
 0x225   : > { %v1942_v25 = vadd.f32 %v739_v22, %v1876_v33  ;;  %v737_v26 = vmax.f32 %v677_v23, 0.0  ;;  %768 = vadd.xlane.f32.xlu0 %v1937_v19  ;;  %v698_v31 = vadd.f32 %v1304_v24, %v1928_v9  ;;  %v816_v36 = vmul.f32 %v1937_v19, %v1937_v19 }
 0x226   : > { %v689_v32 = vpop.f32.mrf.mxu1 }
 0x227   : > { %774 = vadd.xlane.f32.xlu1 %v1942_v25  ;;  %v1949_v28 = vadd.f32 %v737_v26, %v1861_v21  ;;  %v819_v33 = vmul.f32 %v1942_v25, %v1942_v25  ;;  %v742_v48 = vmax.f32 %v698_v31, 0.0  ;;  %v690_v49 = vadd.f32 %v689_v32, %v1928_v9 }
 0x228   : > { %v1305_v20 = vpop.f32.mrf.mxu1 }
 0x229   : > { %v701_v29 = vadd.f32 %v1305_v20, %v1928_v9  ;;  %836 = vadd.xlane.f32.xlu0 %v818_v27  ;;  %v817_v21 = vmul.f32 %v1949_v28, %v1949_v28  ;;  %v1966_v55 = vadd.f32 %v742_v48, %v1886_v38  ;;  %v740_v56 = vmax.f32 %v690_v49, 0.0 }
 0x22a   : > { %v692_v30 = vpop.f32.mrf.mxu1 }
 0x22b   : > { %838 = vadd.xlane.f32.xlu1 %v819_v33  ;;  %v743_v37 = vmax.f32 %v701_v29, 0.0  ;;  %v693_v42 = vadd.f32 %v692_v30, %v1928_v9  ;;  %v1974_v62 = vadd.f32 %v740_v56, %v1878_v34 }
 0x22c   : > { %v1308_v43 = vpop.f32.mrf.mxu1 }
 0x22d   : > { %832 = vadd.xlane.f32.xlu0 %v816_v36  ;;  %v1962_v52 = vadd.f32 %v743_v37, %v1888_v39  ;;  %v741_v53 = vmax.f32 %v693_v42, 0.0  ;;  %v714_v0 = vadd.f32 %v1308_v43, %v1928_v9  ;;  %v820_v6 = vmul.f32 %v1974_v62, %v1974_v62 }
 0x22e   : > { %v705_v54 = vpop.f32.mrf.mxu1 }
 0x22f   : > { %834 = vadd.xlane.f32.xlu1 %v817_v21  ;;  %v1970_v58 = vadd.f32 %v741_v53, %v1880_v35  ;;  %v823_v38 = vmul.f32 %v1962_v52, %v1962_v52  ;;  %v822_v35 = vmul.f32 %v1966_v55, %v1966_v55  ;;  %v746_v4 = vmax.f32 %v714_v0, 0.0 }
 0x230   : > { %v1309_v60 = vpop.f32.mrf.mxu1  ;;  %v706_v5 = vadd.f32 %v705_v54, %v1928_v9 }
 0x231   : > { %770 = vadd.xlane.f32.xlu0 %v1949_v28  ;;  %v717_v39 = vadd.f32 %v1309_v60, %v1928_v9  ;;  %v821_v2 = vmul.f32 %v1970_v58, %v1970_v58  ;;  %v1994_v11 = vadd.f32 %v746_v4, %v1898_v44 }
 0x232   : > { %v708_v63 = vpop.f32.mrf.mxu1  ;;  %v744_v12 = vmax.f32 %v706_v5, 0.0 }
 0x233   : > { %782 = vadd.xlane.f32.xlu1 %v1962_v52  ;;  %v747_v1 = vmax.f32 %v717_v39, 0.0  ;;  %v709_v34 = vadd.f32 %v708_v63, %v1928_v9 }
 0x234   : > { %v1312_v3 = vpop.f32.mrf.mxu1  ;;  %v2002_v15 = vadd.f32 %v744_v12, %v1890_v40 }
 0x235   : > { %780 = vadd.xlane.f32.xlu0 %v1966_v55  ;;  %v1991_v7 = vadd.f32 %v747_v1, %v1900_v45  ;;  %v745_v8 = vmax.f32 %v709_v34, 0.0  ;;  %v730_v17 = vadd.f32 %v1312_v3, %v1928_v9 }
 0x236   : > { %v721_v10 = vpop.f32.mrf.mxu1  ;;  %v824_v26 = vmul.f32 %v2002_v15, %v2002_v15 }
 0x237   : > { %778 = vadd.xlane.f32.xlu1 %v1970_v58  ;;  %v1998_v13 = vadd.f32 %v745_v8, %v1892_v41  ;;  %v827_v44 = vmul.f32 %v1991_v7, %v1991_v7  ;;  %v826_v41 = vmul.f32 %v1994_v11, %v1994_v11  ;;  %v750_v23 = vmax.f32 %v730_v17, 0.0 }
 0x238   : > { %v1313_v14 = vpop.f32.mrf.mxu1  ;;  %v722_v24 = vadd.f32 %v721_v10, %v1928_v9 }
 0x239   : > { %776 = vadd.xlane.f32.xlu0 %v1974_v62  ;;  %v733_v45 = vadd.f32 %v1313_v14, %v1928_v9  ;;  %v825_v22 = vmul.f32 %v1998_v13, %v1998_v13  ;;  %v2022_v20 = vadd.f32 %v750_v23, %v1910_v50 }
 0x23a   : > { %v724_v16 = vpop.f32.mrf.mxu1  ;;  %v748_v29 = vmax.f32 %v722_v24, 0.0 }
 0x23b   : > { %846 = vadd.xlane.f32.xlu1 %v823_v38  ;;  %v751_v18 = vmax.f32 %v733_v45, 0.0  ;;  %v725_v40 = vadd.f32 %v724_v16, %v1928_v9 }
 0x23c   : > { %v2030_v9 = vadd.f32 %v748_v29, %v1902_v46  ;;  %v830_v46 = vmul.f32 %v2022_v20, %v2022_v20 }
 0x23d   : > { %844 = vadd.xlane.f32.xlu0 %v822_v35  ;;  %v2019_v32 = vadd.f32 %v751_v18, %v1912_v51  ;;  %v749_v27 = vmax.f32 %v725_v40, 0.0  ;;  %v994_v40 = vsub.s32 2, %v1919_v57 }
 0x23e   : > { %v828_v50 = vmul.f32 %v2030_v9, %v2030_v9 }
 0x23f   : > { %842 = vadd.xlane.f32.xlu1 %v821_v2  ;;  %v2026_v33 = vadd.f32 %v749_v27, %v1904_v47  ;;  %v831_v47 = vmul.f32 %v2019_v32, %v2019_v32 }
 0x241   : > { %840 = vadd.xlane.f32.xlu0 %v820_v6  ;;  %v829_v51 = vmul.f32 %v2026_v33, %v2026_v33 }
 0x243   : > { %790 = vadd.xlane.f32.xlu1 %v1991_v7 }
 0x245   : > { %788 = vadd.xlane.f32.xlu0 %v1994_v11 }
 0x247   : > { %786 = vadd.xlane.f32.xlu1 %v1998_v13 }
 0x249   : > { %784 = vadd.xlane.f32.xlu0 %v2002_v15 }
 0x24b   : > { %854 = vadd.xlane.f32.xlu1 %v827_v44 }
 0x24d   : > { %852 = vadd.xlane.f32.xlu0 %v826_v41 }
 0x24f   : > { %850 = vadd.xlane.f32.xlu1 %v825_v22 }
 0x251   : > { %848 = vadd.xlane.f32.xlu0 %v824_v26  ;;  %v1014_v26 = vsub.s32 3, %v1919_v57 }
 0x253   : > { %798 = vadd.xlane.f32.xlu1 %v2019_v32 }
 0x255   : > { %796 = vadd.xlane.f32.xlu0 %v2022_v20 }
 0x257   : > { %794 = vadd.xlane.f32.xlu1 %v2026_v33 }
 0x259   : > { %792 = vadd.xlane.f32.xlu0 %v2030_v9 }
 0x25b   : > { %858 = vadd.xlane.f32.xlu1 %v829_v51 }
 0x25d   : > { %856 = vadd.xlane.f32.xlu0 %v828_v50  ;;  %v2063_v50 = vrot.slane %v1923_v59, %v994_v40 }
 0x25f   : > { %862 = vadd.xlane.f32.xlu1 %v831_v47 }
 0x261   : > { %860 = vadd.xlane.f32.xlu0 %v830_v46 }
 0x2ac   : > { %v773_v30 = vpop.xlane.xlu1 %772 }
 0x2ad   : > { %v802_v36 = vmul.f32 0.0078125, %v773_v30 }
 0x2ae   : > { %v769_v31 = vpop.xlane.xlu0 %768 }
 0x2af   : > { %v882_v43 = vmul.f32 %v802_v36, %v802_v36  ;;  %v2044_v48 = vmul.f32 0.0078125, %v769_v31  ;;  %v930_v30 = vsub.f32 %v1933_v61, %v802_v36 }
 0x2b0   : > { %v775_v37 = vpop.xlane.xlu1 %774 }
 0x2b1   : > { %v2042_v42 = vmul.f32 0.0078125, %v775_v37  ;;  %v880_v38 = vmul.f32 %v2044_v48, %v2044_v48  ;;  %v928_v36 = vsub.f32 %v1937_v19, %v2044_v48 }
 0x2b2   : > { %v837_v21 = vpop.xlane.xlu0 %836 }
 0x2b3   : > { %v866_v49 = vmul.f32 0.0078125, %v837_v21  ;;  %v883_v54 = vmul.f32 %v2042_v42, %v2042_v42 }
 0x2b4   : > { %v839_v53 = vpop.xlane.xlu1 %838 }
 0x2b5   : > { %v898_v56 = vsub.f32 %v866_v49, %v882_v43  ;;  %v867_v60 = vmul.f32 0.0078125, %v839_v53  ;;  %v2071_v43 = vrot.slane %v1923_v59, %v1014_v26  ;;  %v931_v49 = vsub.f32 %v1942_v25, %v2042_v42 }
 0x2b6   : > { %v833_v39 = vpop.xlane.xlu0 %832 }
 0x2b7   : > { %v914_v63 = vmax.f32 %v898_v56, 0.0  ;;  %v899_v0 = vsub.f32 %v867_v60, %v883_v54  ;;  %v864_v35 = vmul.f32 0.0078125, %v833_v39 }
 0x2b8   : > { %v835_v1 = vpop.xlane.xlu1 %834 }
 0x2b9   : > { %v946_v34 = vadd.f32 1e-05, %v914_v63  ;;  %v915_v2 = vmax.f32 %v899_v0, 0.0  ;;  %v896_v3 = vsub.f32 %v864_v35, %v880_v38  ;;  %v865_v14 = vmul.f32 0.0078125, %v835_v1 }
 0x2ba   : > { %v771_v4 = vpop.xlane.xlu0 %770 }
 0x2bb   : > { %1419 = vrsqrt.f32 %v946_v34  ;;  %v947_v5 = vadd.f32 1e-05, %v915_v2  ;;  %v912_v6 = vmax.f32 %v896_v3, 0.0  ;;  %v2050_v8 = vmul.f32 0.0078125, %v771_v4 }
 0x2bc   : > { %v783_v10 = vpop.xlane.xlu1 %782 }
 0x2bd   : > { %1421 = vrsqrt.f32 %v947_v5  ;;  %v944_v12 = vadd.f32 1e-05, %v912_v6  ;;  %v881_v45 = vmul.f32 %v2050_v8, %v2050_v8  ;;  %v2054_v18 = vmul.f32 0.0078125, %v783_v10 }
 0x2be   : > { %v781_v44 = vpop.xlane.xlu0 %780 }
 0x2bf   : > { %1423 = vrsqrt.f32 %v944_v12  ;;  %v897_v16 = vsub.f32 %v865_v14, %v881_v45  ;;  %v2057_v24 = vmul.f32 0.0078125, %v781_v44  ;;  %v887_v29 = vmul.f32 %v2054_v18, %v2054_v18 }
 0x2c0   : > { %v779_v17 = vpop.xlane.xlu1 %778 }
 0x2c1   : > { %v913_v41 = vmax.f32 %v897_v16, 0.0  ;;  %v2065_v47 = vmul.f32 0.0078125, %v779_v17  ;;  %v886_v31 = vmul.f32 %v2057_v24, %v2057_v24 }
 0x2c2   : > { %v777_v22 = vpop.xlane.xlu0 %776 }
 0x2c3   : > { %v945_v23 = vadd.f32 1e-05, %v913_v41  ;;  %v2075_v53 = vmul.f32 0.0078125, %v777_v22  ;;  %v885_v63 = vmul.f32 %v2065_v47, %v2065_v47  ;;  %v929_v22 = vsub.f32 %v1949_v28, %v2050_v8 }
 0x2c4   : > { %v847_v27 = vpop.xlane.xlu1 %846 }
 0x2c5   : > { %1425 = vrsqrt.f32 %v945_v23  ;;  %v871_v51 = vmul.f32 0.0078125, %v847_v27  ;;  %v884_v34 = vmul.f32 %v2075_v53, %v2075_v53 }
 0x2c6   : > { %v845_v46 = vpop.xlane.xlu0 %844 }
 0x2c7   : > { %v903_v37 = vsub.f32 %v871_v51, %v887_v29  ;;  %v870_v21 = vmul.f32 0.0078125, %v845_v46 }
 0x2c8   : > { %v1420_v57 = vpop.eup %1419  ;;  %v843_v54 = vpop.xlane.xlu1 %842 }
 0x2c9   : > { %v978_v56 = vmul.f32 %v1420_v57, %v930_v30  ;;  %v919_v60 = vmax.f32 %v903_v37, 0.0  ;;  %v902_v39 = vsub.f32 %v870_v21, %v886_v31  ;;  %v869_v38 = vmul.f32 0.0078125, %v843_v54 }
 0x2ca   : > { %v1422_v61 = vpop.eup %1421  ;;  %v841_v0 = vpop.xlane.xlu0 %840 }
 0x2cb   : > { %v998_v59 = vmul.f32 %v2063_v50, %v978_v56  ;;  %v979_v35 = vmul.f32 %v1422_v61, %v931_v49  ;;  %v951_v1 = vadd.f32 1e-05, %v919_v60  ;;  %v918_v25 = vmax.f32 %v902_v39, 0.0 }
 0x2cc   : > { %v1424_v42 = vpop.eup %1423  ;;  %v901_v2 = vsub.f32 %v869_v38, %v885_v63  ;;  %v868_v3 = vmul.f32 0.0078125, %v841_v0  ;;  %v791_v4 = vpop.xlane.xlu1 %790  ;;  %v935_v60 = vsub.f32 %v1962_v52, %v2054_v18 }
 0x2cd   : > { %v1018_v5 = vadd.f32 %v2071_v43, %v998_v59  ;;  %v999_v19 = vmul.f32 %v2063_v50, %v979_v35  ;;  %v976_v48 = vmul.f32 %v1424_v42, %v928_v36  ;;  %1427 = vrsqrt.f32 %v951_v1 }
 0x2ce   : > { %v950_v6 = vadd.f32 1e-05, %v918_v25  ;;  %v917_v10 = vmax.f32 %v901_v2, 0.0  ;;  %v900_v12 = vsub.f32 %v868_v3, %v884_v34  ;;  %v789_v14 = vpop.xlane.xlu0 %788  ;;  %v2091_v23 = vmul.f32 0.0078125, %v791_v4 }
 0x2cf   : > { %1034 = vst [vmem:[#allocation10 + $0x10] sm:$0xff] %v1018_v5  ;;  %v1019_v45 = vadd.f32 %v2071_v43, %v999_v19  ;;  %v996_v44 = vmul.f32 %v2063_v50, %v976_v48  ;;  %v2093_v46 = vmul.f32 0.0078125, %v789_v14  ;;  %v934_v2 = vsub.f32 %v1966_v55, %v2057_v24 }
 0x2d0   : > { %1429 = vrsqrt.f32 %v950_v6  ;;  %v949_v16 = vadd.f32 1e-05, %v917_v10  ;;  %v916_v17 = vmax.f32 %v900_v12, 0.0  ;;  %v787_v41 = vpop.xlane.xlu1 %786  ;;  %v891_v37 = vmul.f32 %v2091_v23, %v2091_v23 }
 0x2d1   : > { %1035 = vst [vmem:[#allocation10 + $0x18] sm:$0xff] %v1019_v45  ;;  %v1016_v40 = vadd.f32 %v2071_v43, %v996_v44  ;;  %v2098_v21 = vmul.f32 0.0078125, %v787_v41  ;;  %v890_v49 = vmul.f32 %v2093_v46, %v2093_v46  ;;  %v933_v6 = vsub.f32 %v1970_v58, %v2065_v47 }
 0x2d2   : > { %v1426_v26 = vpop.eup %1425  ;;  %1431 = vrsqrt.f32 %v949_v16  ;;  %v948_v27 = vadd.f32 1e-05, %v916_v17  ;;  %v785_v29 = vpop.xlane.xlu0 %784  ;;  %v932_v44 = vsub.f32 %v1974_v62, %v2075_v53 }
 0x2d3   : > { %1032 = vst [vmem:[#allocation10] sm:$0xff] %v1016_v40  ;;  %v977_v51 = vmul.f32 %v1426_v26, %v929_v22  ;;  %v2105_v39 = vmul.f32 0.0078125, %v785_v29  ;;  %v889_v61 = vmul.f32 %v2098_v21, %v2098_v21 }
 0x2d4   : > { %1433 = vrsqrt.f32 %v948_v27  ;;  %v855_v30 = vpop.xlane.xlu1 %854 }
 0x2d5   : > { %v997_v31 = vmul.f32 %v2063_v50, %v977_v51  ;;  %v875_v28 = vmul.f32 0.0078125, %v855_v30  ;;  %v888_v52 = vmul.f32 %v2105_v39, %v2105_v39 }
 0x2d6   : > { %v853_v8 = vpop.xlane.xlu0 %852 }
 0x2d7   : > { %v1017_v57 = vadd.f32 %v2071_v43, %v997_v31  ;;  %v907_v54 = vsub.f32 %v875_v28, %v891_v37  ;;  %v874_v56 = vmul.f32 0.0078125, %v853_v8 }
 0x2d8   : > { %v851_v38 = vpop.xlane.xlu1 %850 }
 0x2d9   : > { %1033 = vst [vmem:[#allocation10 + $0x8] sm:$0xff] %v1017_v57  ;;  %v923_v36 = vmax.f32 %v907_v54, 0.0  ;;  %v906_v63 = vsub.f32 %v874_v56, %v890_v49  ;;  %v873_v0 = vmul.f32 0.0078125, %v851_v38 }
 0x2da   : > { %v1428_v59 = vpop.eup %1427  ;;  %v849_v35 = vpop.xlane.xlu0 %848 }
 0x2db   : > { %v983_v1 = vmul.f32 %v1428_v59, %v935_v60  ;;  %v955_v25 = vadd.f32 1e-05, %v923_v36  ;;  %v922_v42 = vmax.f32 %v906_v63, 0.0  ;;  %v905_v34 = vsub.f32 %v873_v0, %v889_v61 }
 0x2dc   : > { %v872_v18 = vmul.f32 0.0078125, %v849_v35  ;;  %v799_v3 = vpop.xlane.xlu1 %798  ;;  %v939_v36 = vsub.f32 %v1991_v7, %v2091_v23 }
 0x2dd   : > { %v1430_v4 = vpop.eup %1429  ;;  %v1003_v5 = vmul.f32 %v2063_v50, %v983_v1  ;;  %1435 = vrsqrt.f32 %v955_v25  ;;  %v954_v19 = vadd.f32 1e-05, %v922_v42  ;;  %v921_v48 = vmax.f32 %v905_v34, 0.0 }
 0x2de   : > { %v982_v10 = vmul.f32 %v1430_v4, %v934_v2  ;;  %v904_v12 = vsub.f32 %v872_v18, %v888_v52  ;;  %v797_v14 = vpop.xlane.xlu0 %796  ;;  %v2128_v37 = vmul.f32 0.0078125, %v799_v3  ;;  %v938_v1 = vsub.f32 %v1994_v11, %v2093_v46 }
 0x2df   : > { %v1432_v45 = vpop.eup %1431  ;;  %v1023_v55 = vadd.f32 %v2071_v43, %v1003_v5  ;;  %1437 = vrsqrt.f32 %v954_v19  ;;  %v953_v24 = vadd.f32 1e-05, %v921_v48  ;;  %v2135_v60 = vmul.f32 0.0078125, %v797_v14 }
 0x2e0   : > { %v1002_v16 = vmul.f32 %v2063_v50, %v982_v10  ;;  %v981_v17 = vmul.f32 %v1432_v45, %v933_v6  ;;  %v920_v41 = vmax.f32 %v904_v12, 0.0  ;;  %v795_v40 = vpop.xlane.xlu1 %794  ;;  %v895_v63 = vmul.f32 %v2128_v37, %v2128_v37 }
 0x2e1   : > { %v1434_v22 = vpop.eup %1433  ;;  %1039 = vst [vmem:[#allocation10 + $0x38] sm:$0xff] %v1023_v55  ;;  %1439 = vrsqrt.f32 %v953_v24  ;;  %v2122_v51 = vmul.f32 0.0078125, %v795_v40  ;;  %v937_v4 = vsub.f32 %v1998_v13, %v2098_v21  ;;  %v894_v7 = vmul.f32 %v2135_v60, %v2135_v60 }
 0x2e2   : > { %v1022_v58 = vadd.f32 %v2071_v43, %v1002_v16  ;;  %v1001_v47 = vmul.f32 %v2063_v50, %v981_v17  ;;  %v980_v26 = vmul.f32 %v1434_v22, %v932_v44  ;;  %v952_v27 = vadd.f32 1e-05, %v920_v41  ;;  %v793_v29 = vpop.xlane.xlu0 %792 }
 0x2e3   : > { %v2124_v30 = vmul.f32 0.0078125, %v793_v29  ;;  %v893_v8 = vmul.f32 %v2122_v51, %v2122_v51  ;;  %v936_v13 = vsub.f32 %v2002_v15, %v2105_v39  ;;  %v941_v39 = vsub.f32 %v2026_v33, %v2122_v51 }
 0x2e4   : > { %1038 = vst [vmem:[#allocation10 + $0x30] sm:$0xff] %v1022_v58  ;;  %v1021_v62 = vadd.f32 %v2071_v43, %v1001_v47  ;;  %v1000_v53 = vmul.f32 %v2063_v50, %v980_v26  ;;  %1441 = vrsqrt.f32 %v952_v27  ;;  %v859_v31 = vpop.xlane.xlu1 %858  ;;  %v943_v29 = vsub.f32 %v2019_v32, %v2128_v37 }
 0x2e5   : > { %v877_v57 = vmul.f32 0.0078125, %v859_v31  ;;  %v892_v54 = vmul.f32 %v2124_v30, %v2124_v30  ;;  %v940_v58 = vsub.f32 %v2030_v9, %v2124_v30 }
 0x2e6   : > { %1037 = vst [vmem:[#allocation10 + $0x28] sm:$0xff] %v1021_v62  ;;  %v1020_v28 = vadd.f32 %v2071_v43, %v1000_v53  ;;  %v857_v49 = vpop.xlane.xlu0 %856 }
 0x2e7   : > { %v876_v56 = vmul.f32 0.0078125, %v857_v49  ;;  %v909_v38 = vsub.f32 %v877_v57, %v893_v8 }
 0x2e8   : > { %1036 = vst [vmem:[#allocation10 + $0x20] sm:$0xff] %v1020_v28  ;;  %v863_v61 = vpop.xlane.xlu1 %862  ;;  %v942_v28 = vsub.f32 %v2022_v20, %v2135_v60 }
 0x2e9   : > { %v908_v0 = vsub.f32 %v876_v56, %v892_v54  ;;  %v879_v59 = vmul.f32 0.0078125, %v863_v61  ;;  %v925_v25 = vmax.f32 %v909_v38, 0.0 }
 0x2ea   : > { %v1436_v35 = vpop.eup %1435  ;;  %v861_v42 = vpop.xlane.xlu0 %860 }
 0x2eb   : > { %v987_v34 = vmul.f32 %v1436_v35, %v939_v36  ;;  %v924_v2 = vmax.f32 %v908_v0, 0.0  ;;  %v911_v52 = vsub.f32 %v879_v59, %v895_v63  ;;  %v878_v18 = vmul.f32 0.0078125, %v861_v42 }
 0x2ec   : > { %v1438_v3 = vpop.eup %1437  ;;  %v957_v23 = vadd.f32 1e-05, %v925_v25 }
 0x2ed   : > { %v1007_v5 = vmul.f32 %v2063_v50, %v987_v34  ;;  %v986_v19 = vmul.f32 %v1438_v3, %v938_v1  ;;  %v956_v48 = vadd.f32 1e-05, %v924_v2  ;;  %v927_v6 = vmax.f32 %v911_v52, 0.0 }
 0x2ee   : > { %v1440_v11 = vpop.eup %1439  ;;  %1443 = vrsqrt.f32 %v957_v23  ;;  %v910_v46 = vsub.f32 %v878_v18, %v894_v7 }
 0x2ef   : > { %v1027_v10 = vadd.f32 %v2071_v43, %v1007_v5  ;;  %v1006_v12 = vmul.f32 %v2063_v50, %v986_v19  ;;  %v985_v14 = vmul.f32 %v1440_v11, %v937_v4  ;;  %1445 = vrsqrt.f32 %v956_v48 }
 0x2f0   : > { %v959_v21 = vadd.f32 1e-05, %v927_v6  ;;  %v926_v45 = vmax.f32 %v910_v46, 0.0 }
 0x2f1   : > { %v1442_v55 = vpop.eup %1441  ;;  %1043 = vst [vmem:[#allocation10 + $0x58] sm:$0xff] %v1027_v10  ;;  %v1026_v24 = vadd.f32 %v2071_v43, %v1006_v12  ;;  %v1005_v44 = vmul.f32 %v2063_v50, %v985_v14 }
 0x2f2   : > { %v984_v16 = vmul.f32 %v1442_v55, %v936_v13  ;;  %1447 = vrsqrt.f32 %v959_v21  ;;  %v958_v17 = vadd.f32 1e-05, %v926_v45 }
 0x2f3   : > { %1042 = vst [vmem:[#allocation10 + $0x50] sm:$0xff] %v1026_v24  ;;  %v1025_v41 = vadd.f32 %v2071_v43, %v1005_v44 }
 0x2f4   : > { %v1004_v40 = vmul.f32 %v2063_v50, %v984_v16  ;;  %1449 = vrsqrt.f32 %v958_v17 }
 0x2f5   : > { %1041 = vst [vmem:[#allocation10 + $0x48] sm:$0xff] %v1025_v41 }
 0x2f6   : > { %v1024_v15 = vadd.f32 %v2071_v43, %v1004_v40 }
 0x2f8   : > { %1040 = vst [vmem:[#allocation10 + $0x40] sm:$0xff] %v1024_v15 }
 0x2fb   : > { %v1444_v22 = vpop.eup %1443 }
 0x2fc   : > { %v1446_v47 = vpop.eup %1445  ;;  %v989_v26 = vmul.f32 %v1444_v22, %v941_v39 }
 0x2fd   : > { %v988_v27 = vmul.f32 %v1446_v47, %v940_v58 }
 0x2fe   : > { %v1009_v62 = vmul.f32 %v2063_v50, %v989_v26 }
 0x2ff   : > { %v1448_v53 = vpop.eup %1447  ;;  %v1008_v31 = vmul.f32 %v2063_v50, %v988_v27 }
 0x300   : > { %v1029_v33 = vadd.f32 %v2071_v43, %v1009_v62  ;;  %v991_v51 = vmul.f32 %v1448_v53, %v943_v29 }
 0x301   : > { %v1450_v8 = vpop.eup %1449  ;;  %v1028_v9 = vadd.f32 %v2071_v43, %v1008_v31 }
 0x302   : > { %1045 = vst [vmem:[#allocation10 + $0x68] sm:$0xff] %v1029_v33  ;;  %v1011_v30 = vmul.f32 %v2063_v50, %v991_v51  ;;  %v990_v32 = vmul.f32 %v1450_v8, %v942_v28 }
 0x303   : > { %1044 = vst [vmem:[#allocation10 + $0x60] sm:$0xff] %v1028_v9 }
 0x304   : > { %v1031_v37 = vadd.f32 %v2071_v43, %v1011_v30  ;;  %v1010_v57 = vmul.f32 %v2063_v50, %v990_v32 }
 0x306   : > { %1047 = vst [vmem:[#allocation10 + $0x78] sm:$0xff] %v1031_v37  ;;  %v1030_v20 = vadd.f32 %v2071_v43, %v1010_v57 }
 0x308   : > { %1046 = vst [vmem:[#allocation10 + $0x70] sm:$0xff] %v1030_v20 }
 0x309   : > { %1574 = shalt.err (!%p1571_p11)
}
 0x30a   : > { %s1658_s29 = smov 128   ;;  %s1659_s7 = smov 8  }
 0x30b   : > { %1325 = dma.vmem_to_hbm [thread:$0]  (%p1345_p7), %s1058_s26, 2048, %s2207_s4, [#allocation4], %s1658_s29, %s1658_s29, %s1659_s7  }
 0x30c   : > { %1622 = dma.done.wait (%p1345_p7), [#allocation4], 2048  }
 0x30d   : > { %1624 = vsyncadd (%p1345_p7), [#allocation4], 4294965248 }
 0x30e PF: > { %s22_s20 = sadd.s32 1, %s1647_s20   ;;  %s2216_s15 = smov %s1631_s16 }
 0x30f   : > { %p19_p12 = scmp.ge.s32.totalorder %s22_s20, 5   ;;  %s2217_s16 = smov %s1635_s17 }
 0x310   : > { %s2218_s17 = smov %s1731_s27  ;;  %s2219_s18 = smov %s1643_s19 }
 0x311   : > { %s2220_s19 = smov %s2222_s21  ;;  %21 = sbr.rel (!%p19_p12) target bundleno = 11 (0xb), region = 108 }
 0x316   :  { %1073 = vsyncpa [#allocation3], 1 }
 0x317   :  { %1075 = vsyncpa [#allocation3 + $0x1], 1 }
 0x318   :  { %1076 = vsyncpa [#allocation6], 1 }
 0x319   :  { %1078 = vsyncpa [#allocation6 + $0x1], 1 }
 0x31a   :  { %1079 = vsyncpa [#allocation9], 1 }
 0x31b   :  { %1081 = vsyncpa [#allocation9 + $0x1], 1 }
 0x31c   :  { %1082 = vsyncpa [#allocation4], 1 }
 0x31d   :  { %1084 = vsyncpa [#allocation4 + $0x1], 1 }

</bundles_post_ra>
